<compile_context>
chip_gen: v7x
topology: tpu7x:2x2x1
jax: 0.10.0
libtpu: 0.0.40
codegen_flags: <defaults>
</compile_context>

<pallas_src>
import functools

import jax
import jax.numpy as jnp
from jax.experimental import pallas as pl
from jax.experimental.pallas import tpu as pltpu

BN_EPS = 1e-5
VMEM_LIMIT = 32 * 1024 * 1024  # explicit cap: safe on v5e/v6e/v7x


def _round_up(a, b):
    return (a + b - 1) // b * b


def _conv_stats_kernel(w_ref, p_ref, y_ref, sum_ref, ssq_ref):
    """Pass 1: y = W @ patches tile; accumulate per-channel sum / sum^2."""
    first = jnp.logical_and(pl.program_id(0) == 0, pl.program_id(1) == 0)

    @pl.when(first)
    def _():
        sum_ref[...] = jnp.zeros_like(sum_ref)
        ssq_ref[...] = jnp.zeros_like(ssq_ref)

    # [Cout_p, K_pad] @ [K_pad, tile_S] -> [Cout_p, tile_S] with f32 accum.
    y = jnp.dot(w_ref[...], p_ref[...], preferred_element_type=jnp.float32)
    y_ref[...] = y

    # Padded S columns are all-zero patches -> contribute 0 to both sums;
    # the real element count is divided out in pass 2.
    sum_ref[...] += jnp.sum(y, axis=1, keepdims=True)
    ssq_ref[...] += jnp.sum(y * y, axis=1, keepdims=True)


def _bn_relu_kernel(sum_ref, ssq_ref, gamma_ref, beta_ref, y_ref, o_ref, *,
                    inv_count, include_relu):
    """Pass 2: BN folded into one FMA per element, then ReLU."""
    mean = sum_ref[...] * inv_count                                  # [Cout_p, 1]
    var = jnp.maximum(ssq_ref[...] * inv_count - mean * mean, 0.0)
    scale = gamma_ref[...] * jax.lax.rsqrt(var + BN_EPS)
    bias = beta_ref[...] - mean * scale
    out = y_ref[...] * scale + bias
    if include_relu:
        out = jnp.maximum(out, 0.0)
    o_ref[...] = out.astype(o_ref.dtype)


def _im2col_3d(x, kernel_size, stride, padding):
    """x: [N, Cin, D, H, W] -> patches [N, Cin*k^3, Do*Ho*Wo] (Cin major)."""
    kd = kh = kw = kernel_size
    s, p = stride, padding
    N, Cin, D, H, W = x.shape
    xp = jnp.pad(x, ((0, 0), (0, 0), (p, p), (p, p), (p, p)))
    Dp, Hp, Wp = D + 2 * p, H + 2 * p, W + 2 * p
    Do = (Dp - kd) // s + 1
    Ho = (Hp - kh) // s + 1
    Wo = (Wp - kw) // s + 1

    slabs = []
    for dz in range(kd):
        for dy in range(kh):
            for dx in range(kw):
                slabs.append(
                    xp[:, :,
                       dz:dz + (Do - 1) * s + 1:s,
                       dy:dy + (Ho - 1) * s + 1:s,
                       dx:dx + (Wo - 1) * s + 1:s])
    # [Kpos, N, Cin, Do, Ho, Wo] -> [N, Cin, Kpos, Do, Ho, Wo] -> [N, K, S]
    # (Cin-major K matches PyTorch's Conv3d weight flatten [Cout, Cin, kd, kh, kw]).
    stacked = jnp.stack(slabs, axis=0)
    patches = jnp.transpose(stacked, (1, 2, 0, 3, 4, 5))
    patches = patches.reshape(N, Cin * kd * kh * kw, Do * Ho * Wo)
    return patches, (Do, Ho, Wo)


def basic3d_conv_block(x, conv_weight, bn_gamma, bn_beta, *,
                       kernel_size=3, stride=1, padding=0, include_relu=True,
                       tile_s=512):
    """x: [N, Cin, D, H, W]; conv_weight: [Cout, Cin, k, k, k].
    Returns [N, Cout, Do, Ho, Wo] in f32 (training-mode batch-stat BN)."""
    N, Cin = x.shape[0], x.shape[1]
    Cout = conv_weight.shape[0]
    K = Cin * kernel_size ** 3

    # bf16 operands (full-rate MXU + half the HBM bytes); f32 everywhere else.
    # TODO(synk): fuse im2col into the kernel (halo DMA of input tiles) to kill
    # the k^3 HBM blowup of the materialized patches array.
    patches, (Do, Ho, Wo) = _im2col_3d(x.astype(jnp.bfloat16), kernel_size,
                                       stride, padding)
    S = Do * Ho * Wo

    # Tile-legal padded sizes: K to the 128-wide MXU contraction, Cout to the
    # 8-sublane granule, S to a lane-dense multiple of tile_s (>= 128).
    K_pad = _round_up(K, 128)
    Cout_p = _round_up(Cout, 8)
    tile_s = min(_round_up(max(tile_s, 128), 128), _round_up(S, 128))
    S_pad = _round_up(_round_up(S, 128), tile_s)
    n_s = S_pad // tile_s
    grid = (N, n_s)

    patches = jnp.pad(patches, ((0, 0), (0, K_pad - K), (0, S_pad - S)))
    w2d = conv_weight.astype(jnp.bfloat16).reshape(Cout, K)
    w2d = jnp.pad(w2d, ((0, Cout_p - Cout), (0, K_pad - K)))
    gamma = jnp.pad(bn_gamma.astype(jnp.float32),
                    (0, Cout_p - Cout)).reshape(Cout_p, 1)
    beta = jnp.pad(bn_beta.astype(jnp.float32),
                   (0, Cout_p - Cout)).reshape(Cout_p, 1)

    # ---- Pass 1: conv matmul + global channel statistics -------------------
    y, ch_sum, ch_ssq = pl.pallas_call(
        _conv_stats_kernel,
        grid=grid,
        in_specs=[
            # weight stays resident in VMEM across the whole grid
            pl.BlockSpec((Cout_p, K_pad), lambda n, s: (0, 0)),
            # patches tile: [K_pad, tile_s], double-buffered by Pallas
            pl.BlockSpec((None, K_pad, tile_s), lambda n, s: (n, 0, s)),
        ],
        out_specs=(
            pl.BlockSpec((None, Cout_p, tile_s), lambda n, s: (n, 0, s)),
            pl.BlockSpec((Cout_p, 1), lambda n, s: (0, 0)),   # resident sum acc
            pl.BlockSpec((Cout_p, 1), lambda n, s: (0, 0)),   # resident sum^2 acc
        ),
        out_shape=(
            jax.ShapeDtypeStruct((N, Cout_p, S_pad), jnp.float32),
            jax.ShapeDtypeStruct((Cout_p, 1), jnp.float32),
            jax.ShapeDtypeStruct((Cout_p, 1), jnp.float32),
        ),
        compiler_params=pltpu.CompilerParams(
            dimension_semantics=("arbitrary", "arbitrary"),
            vmem_limit_bytes=VMEM_LIMIT),
    )(w2d, patches)

    # ---- Pass 2: folded BN (scale/bias FMA) + ReLU, fully parallel ---------
    inv_count = 1.0 / float(N * S)
    bn_kernel = functools.partial(_bn_relu_kernel, inv_count=inv_count,
                                  include_relu=include_relu)
    out3d = pl.pallas_call(
        bn_kernel,
        grid=grid,
        in_specs=[
            pl.BlockSpec((Cout_p, 1), lambda n, s: (0, 0)),
            pl.BlockSpec((Cout_p, 1), lambda n, s: (0, 0)),
            pl.BlockSpec((Cout_p, 1), lambda n, s: (0, 0)),
            pl.BlockSpec((Cout_p, 1), lambda n, s: (0, 0)),
            pl.BlockSpec((None, Cout_p, tile_s), lambda n, s: (n, 0, s)),
        ],
        out_specs=pl.BlockSpec((None, Cout_p, tile_s), lambda n, s: (n, 0, s)),
        out_shape=jax.ShapeDtypeStruct((N, Cout_p, S_pad), jnp.float32),
        compiler_params=pltpu.CompilerParams(
            dimension_semantics=("parallel", "parallel"),
            vmem_limit_bytes=VMEM_LIMIT),
    )(ch_sum, ch_ssq, gamma, beta, y)

    # [N, Cout_p, S_pad] -> slice padding -> NCDHW via reshape only.
    return out3d[:, :Cout, :S].reshape(N, Cout, Do, Ho, Wo)


def _reference(x, conv_weight, bn_gamma, bn_beta, *, stride, padding,
               include_relu):
    """Pure-JAX reference (lax conv + batch-stat BN + ReLU)."""
    y = jax.lax.conv_general_dilated(
        x.astype(jnp.float32), conv_weight.astype(jnp.float32),
        window_strides=(stride, stride, stride),
        padding=[(padding, padding)] * 3,
        dimension_numbers=("NCDHW", "OIDHW", "NCDHW"))
    mean = jnp.mean(y, axis=(0, 2, 3, 4), keepdims=True)
    var = jnp.mean(jnp.square(y - mean), axis=(0, 2, 3, 4), keepdims=True)
    y = (y - mean) * jax.lax.rsqrt(var + BN_EPS)
    y = y * bn_gamma.reshape(1, -1, 1, 1, 1) + bn_beta.reshape(1, -1, 1, 1, 1)
    if include_relu:
        y = jnp.maximum(y, 0.0)
    return y


if __name__ == "__main__":
    key = jax.random.PRNGKey(0)
    k_x, k_w, k_g, k_b = jax.random.split(key, 4)

    # Basic3DConvBlock(in_channels=4, out_channels=8, kernel_size=3, padding=0)
    N, Cin, D, H, W = 2, 4, 8, 8, 8
    Cout, ks, stride, padding = 8, 3, 1, 0

    x = jax.random.normal(k_x, (N, Cin, D, H, W), dtype=jnp.float32)
    conv_w = 0.1 * jax.random.normal(k_w, (Cout, Cin, ks, ks, ks),
                                     dtype=jnp.float32)
    bn_gamma = 1.0 + 0.1 * jax.random.normal(k_g, (Cout,), dtype=jnp.float32)
    bn_beta = 0.1 * jax.random.normal(k_b, (Cout,), dtype=jnp.float32)

    out = basic3d_conv_block(x, conv_w, bn_gamma, bn_beta, kernel_size=ks,
                             stride=stride, padding=padding, include_relu=True,
                             tile_s=128)   # small tile -> multi-step grid
    out = jax.block_until_ready(out)

    # Tight check vs a reference fed the same bf16-rounded operands, loose
    # check vs the pure-f32 module semantics (bf16 matmul is the only delta).
    x_bf = x.astype(jnp.bfloat16).astype(jnp.float32)
    w_bf = conv_w.astype(jnp.bfloat16).astype(jnp.float32)
    ref_bf = _reference(x_bf, w_bf, bn_gamma, bn_beta, stride=stride,
                        padding=padding, include_relu=True)
    ref_f32 = _reference(x, conv_w, bn_gamma, bn_beta, stride=stride,
                         padding=padding, include_relu=True)
    assert out.shape == ref_f32.shape
    assert jnp.allclose(out, ref_bf, atol=2e-3, rtol=2e-3)
    assert jnp.allclose(out, ref_f32, atol=5e-2, rtol=5e-2)

    # Second config: stride=2, padding=1, no ReLU, different channel counts.
    N2, Cin2, Cout2 = 2, 3, 16
    x2 = jax.random.normal(k_x, (N2, Cin2, D, H, W), dtype=jnp.float32)
    w2 = 0.1 * jax.random.normal(k_w, (Cout2, Cin2, ks, ks, ks),
                                 dtype=jnp.float32)
    g2 = jnp.ones((Cout2,), jnp.float32)
    b2 = jnp.zeros((Cout2,), jnp.float32)
    out2 = basic3d_conv_block(x2, w2, g2, b2, kernel_size=ks, stride=2,
                              padding=1, include_relu=False)
    out2 = jax.block_until_ready(out2)
    ref2 = _reference(x2.astype(jnp.bfloat16).astype(jnp.float32),
                      w2.astype(jnp.bfloat16).astype(jnp.float32),
                      g2, b2, stride=2, padding=1, include_relu=False)
    assert out2.shape == ref2.shape
    assert jnp.allclose(out2, ref2, atol=2e-3, rtol=2e-3)

    print("KERNEL_OK")
</pallas_src>

<mosaic_0001>
module attributes {stable_mosaic.version = 11 : i64} {
  func.func @_conv_stats_kernel(%arg0: i32, %arg1: i32, %arg2: memref<8x128xbf16, #tpu.memory_space<vmem>>, %arg3: memref<1x128x128xbf16, #tpu.memory_space<vmem>>, %arg4: memref<1x8x128xf32, #tpu.memory_space<vmem>>, %arg5: memref<8x1xf32, #tpu.memory_space<vmem>>, %arg6: memref<8x1xf32, #tpu.memory_space<vmem>>) attributes {dimension_semantics = [#tpu.dimension_semantics<arbitrary>, #tpu.dimension_semantics<arbitrary>], iteration_bounds = array<i64: 2, 2>, scalar_prefetch = 0 : i64, scratch_operands = 0 : i64, tpu.core_type = #tpu.core_type<tc>, window_params = [{pipeline_mode = #tpu.pipeline_mode<synchronous>, transform_indices = @transform_0, window_bounds = array<i64: 8, 128>}, {transform_indices = @transform_1, window_bounds = array<i64: 1, 128, 128>}, {transform_indices = @transform_2, window_bounds = array<i64: 1, 8, 128>}, {pipeline_mode = #tpu.pipeline_mode<synchronous>, transform_indices = @transform_3, window_bounds = array<i64: 8, 1>}, {pipeline_mode = #tpu.pipeline_mode<synchronous>, transform_indices = @transform_4, window_bounds = array<i64: 8, 1>}]} {
    %c0_i32 = arith.constant 0 : i32
    %0 = arith.cmpi eq, %arg0, %c0_i32 : i32
    %c0_i32_0 = arith.constant 0 : i32
    %1 = arith.cmpi eq, %arg1, %c0_i32_0 : i32
    %2 = arith.andi %0, %1 : i1
    %3 = arith.extui %2 : i1 to i32
    %c0_i32_1 = arith.constant 0 : i32
    %4 = arith.cmpi ne, %3, %c0_i32_1 : i32
    scf.if %4 {
      %cst_19 = arith.constant 0.000000e+00 : f32
      %23 = vector.broadcast %cst_19 : f32 to vector<8x1xf32>
      %c0_20 = arith.constant 0 : index
      %c0_21 = arith.constant 0 : index
      %24 = vector.load %arg5[%c0_20, %c0_21] : memref<8x1xf32, #tpu.memory_space<vmem>>, vector<8x1xf32>
      tpu.vector_store %arg5[%c0_20, %c0_21], %23 {strides = array<i32>} : memref<8x1xf32, #tpu.memory_space<vmem>>, vector<8x1xf32>,
      %cst_22 = arith.constant 0.000000e+00 : f32
      %25 = vector.broadcast %cst_22 : f32 to vector<8x1xf32>
      %c0_23 = arith.constant 0 : index
      %c0_24 = arith.constant 0 : index
      %26 = vector.load %arg6[%c0_23, %c0_24] : memref<8x1xf32, #tpu.memory_space<vmem>>, vector<8x1xf32>
      tpu.vector_store %arg6[%c0_23, %c0_24], %25 {strides = array<i32>} : memref<8x1xf32, #tpu.memory_space<vmem>>, vector<8x1xf32>,
    } else {
    }
    %c0 = arith.constant 0 : index
    %c0_2 = arith.constant 0 : index
    %5 = vector.load %arg2[%c0, %c0_2] : memref<8x128xbf16, #tpu.memory_space<vmem>>, vector<8x128xbf16>
    %c0_3 = arith.constant 0 : index
    %c0_4 = arith.constant 0 : index
    %c0_5 = arith.constant 0 : index
    %6 = vector.load %arg3[%c0_3, %c0_4, %c0_5] : memref<1x128x128xbf16, #tpu.memory_space<vmem>>, vector<1x128x128xbf16>
    %7 = vector.shape_cast %6 : vector<1x128x128xbf16> to vector<128x128xbf16>
    %cst = arith.constant dense<0.000000e+00> : vector<8x128xf32>
    %8 = tpu.matmul %5, %7, %cst {dimension_numbers = #tpu.dot_dimension_numbers<[1], [0], [0], [1], [0, 0, 1, 1], [], []>} : vector<8x128xbf16>, vector<128x128xbf16>, vector<8x128xf32> -> vector<8x128xf32>
    %c0_6 = arith.constant 0 : index
    %c0_7 = arith.constant 0 : index
    %c0_8 = arith.constant 0 : index
    %9 = vector.load %arg4[%c0_6, %c0_7, %c0_8] : memref<1x8x128xf32, #tpu.memory_space<vmem>>, vector<1x8x128xf32>
    %10 = vector.shape_cast %9 : vector<1x8x128xf32> to vector<8x128xf32>
    %11 = vector.shape_cast %8 : vector<8x128xf32> to vector<1x8x128xf32>
    tpu.vector_store %arg4[%c0_6, %c0_7, %c0_8], %11 {strides = array<i32>} : memref<1x8x128xf32, #tpu.memory_space<vmem>>, vector<1x8x128xf32>,
    %c0_9 = arith.constant 0 : index
    %c0_10 = arith.constant 0 : index
    %12 = vector.load %arg5[%c0_9, %c0_10] : memref<8x1xf32, #tpu.memory_space<vmem>>, vector<8x1xf32>
    %cst_11 = arith.constant dense<0.000000e+00> : vector<8xf32>
    %13 = vector.multi_reduction <add>, %8, %cst_11 [1] : vector<8x128xf32> to vector<8xf32>
    %14 = vector.shape_cast %13 : vector<8xf32> to vector<8x1xf32>
    %15 = arith.addf %12, %14 : vector<8x1xf32>
    %c0_12 = arith.constant 0 : index
    %c0_13 = arith.constant 0 : index
    %16 = vector.load %arg5[%c0_12, %c0_13] : memref<8x1xf32, #tpu.memory_space<vmem>>, vector<8x1xf32>
    tpu.vector_store %arg5[%c0_12, %c0_13], %15 {strides = array<i32>} : memref<8x1xf32, #tpu.memory_space<vmem>>, vector<8x1xf32>,
    %c0_14 = arith.constant 0 : index
    %c0_15 = arith.constant 0 : index
    %17 = vector.load %arg6[%c0_14, %c0_15] : memref<8x1xf32, #tpu.memory_space<vmem>>, vector<8x1xf32>
    %18 = arith.mulf %8, %8 : vector<8x128xf32>
    %cst_16 = arith.constant dense<0.000000e+00> : vector<8xf32>
    %19 = vector.multi_reduction <add>, %18, %cst_16 [1] : vector<8x128xf32> to vector<8xf32>
    %20 = vector.shape_cast %19 : vector<8xf32> to vector<8x1xf32>
    %21 = arith.addf %17, %20 : vector<8x1xf32>
    %c0_17 = arith.constant 0 : index
    %c0_18 = arith.constant 0 : index
    %22 = vector.load %arg6[%c0_17, %c0_18] : memref<8x1xf32, #tpu.memory_space<vmem>>, vector<8x1xf32>
    tpu.vector_store %arg6[%c0_17, %c0_18], %21 {strides = array<i32>} : memref<8x1xf32, #tpu.memory_space<vmem>>, vector<8x1xf32>,
    return
  }
  func.func @transform_0(%arg0: i32, %arg1: i32) -> (i32, i32) {
    %c0_i32 = arith.constant 0 : i32
    %c0_i32_0 = arith.constant 0 : i32
    %c0_i32_1 = arith.constant 0 : i32
    return %c0_i32, %c0_i32_0 : i32, i32
  }
  func.func @transform_1(%arg0: i32, %arg1: i32) -> (i32, i32, i32) {
    %c0_i32 = arith.constant 0 : i32
    %c0_i32_0 = arith.constant 0 : i32
    return %arg0, %c0_i32, %arg1 : i32, i32, i32
  }
  func.func @transform_2(%arg0: i32, %arg1: i32) -> (i32, i32, i32) {
    %c0_i32 = arith.constant 0 : i32
    %c0_i32_0 = arith.constant 0 : i32
    return %arg0, %c0_i32, %arg1 : i32, i32, i32
  }
  func.func @transform_3(%arg0: i32, %arg1: i32) -> (i32, i32) {
    %c0_i32 = arith.constant 0 : i32
    %c0_i32_0 = arith.constant 0 : i32
    %c0_i32_1 = arith.constant 0 : i32
    return %c0_i32, %c0_i32_0 : i32, i32
  }
  func.func @transform_4(%arg0: i32, %arg1: i32) -> (i32, i32) {
    %c0_i32 = arith.constant 0 : i32
    %c0_i32_0 = arith.constant 0 : i32
    %c0_i32_1 = arith.constant 0 : i32
    return %c0_i32, %c0_i32_0 : i32, i32
  }
}

</mosaic_0001>

<bundles_post_ra>
// kernel: tpu_custom_call.1
= control target key start
LH: loop header
LB: loop body
LE: loop exit
PB: predicated region body
PF: predicated region fallthrough
CT: control target
= control target key end

     0   :  { %s1111_s0 = inlined_call_operand.hbm [shape: bf16[8,128], index: 0, kind: input, shape index: {}]   ;;  %s1112_s1 = inlined_call_operand.hbm [shape: bf16[2,128,256], index: 1, kind: input, shape index: {}]   ;;  %s1113_s2 = inlined_call_operand.hbm [shape: f32[2,8,256], index: 2, kind: output, shape index: {0}]   ;;  %s1114_s3 = inlined_call_operand.vmem [shape: f32[8,1], index: 3, kind: output, shape index: {1}]   ;;  %s1115_s4 = inlined_call_operand.vmem [shape: f32[8,1], index: 4, kind: output, shape index: {2}]  }
   0x1   :  { %1125 = sst [smem:[#allocation14_spill]] %s1111_s0 }
   0x2   :  { %10 = vsyncpa [#allocation3], 0 }
   0x3   :  { %11 = vsyncpa [#allocation6], 0 }
   0x4   :  { %13 = vsyncpa [#allocation6 + $0x1], 0 }
   0x5   :  { %14 = vsyncpa [#allocation4], 0 }
   0x6   :  { %16 = vsyncpa [#allocation4 + $0x1], 0  ;;  %s847_s15 = smov 0   ;;  %s849_s16 = smov 0  }
   0x7   :  { %s851_s17 = smov 0   ;;  %s853_s18 = smov 0  }
   0x8   :  { %s855_s19 = smov 0   ;;  %s857_s20 = smov 0  }
   0x9   :  { %s859_s21 = smov 0   ;;  %s861_s22 = smov 0  }
   0xa LB: > { %1126 = sst [smem:[#allocation11_spill]] %s803_s20  ;;  %s494_s23 = sadd.s32 4294967295, %s811_s22   ;;  %s811_s22 = sphi %s861_s22, %s22_s22   ;;  %s807_s21 = sphi %s859_s21, %s1153_s21   ;;  %s803_s20 = sphi %s857_s20, %s1152_s20   ;;  %s799_s19 = sphi %s855_s19, %s1151_s19   ;;  %s795_s18 = sphi %s853_s18, %s1146_s18   ;;  %s791_s17 = sphi %s851_s17, %s1150_s17   ;;  %s787_s16 = sphi %s849_s16, %s1149_s16   ;;  %s783_s15 = sphi %s847_s15, %s1148_s15  }
   0xb   : > { %s495_s24 = sadd.s32 4294967294, %s811_s22   ;;  %p71_p0 = scmp.ne.s32.totalorder %s791_s17, %s787_s16 }
   0xc   : > { %p72_p1 = scmp.eq.s32.totalorder %s811_s22, 0  ;;  %p77_p2 = scmp.ne.s32.totalorder %s787_s16, %s783_s15 }
   0xd   : > { %p895_p3 = scmp.eq.s32.totalorder %s494_s23, 0  ;;  %p103_p4 = scmp.eq.s32.totalorder %s494_s23, 3 }
   0xe   : > { %p899_p5 = por %p72_p1, %p71_p0  ;;  %p109_p6 = scmp.eq.s32.totalorder %s495_s24, 3 }
   0xf   : > { %s1127_s26 = scalar_select %p895_p3, 1, 0 }
  0x10   : > { %p905_p7 = por %p895_p3, %p77_p2  ;;  %p909_p8 = por %p103_p4, %p71_p0 }
  0x11   : > { %p913_p9 = por %p109_p6, %p77_p2  ;;  %p496_p10 = scmp.ge.s32.totalorder %s811_s22, 1 }
  0x12   : > { %s1129_s28 = scalar_select %p905_p7, 1, 0 }
  0x13   : > { %s1130_s29 = scalar_select %p909_p8, 1, 0 }
  0x14   : > { %s1131_s30 = scalar_select %p913_p9, 1, 0 }
  0x15   : > { %p158_p11 = scmp.lt.s32.totalorder %s811_s22, 5  ;;  %s813_s6 = smov [#allocation2]  }
  0x16   : > { %1132 = sst [smem:[#allocation12_spill]] %s1131_s30  ;;  %s171_s7 = sshll.u32 %s813_s6, 4  ;;  %s172_s7 = int_to_ptr.vmem [resolvable:$true] %s171_s7 }
  0x17   : > { %p919_p12 = pnand %p496_p10, %p158_p11  ;;  %p569_p13 = scmp.lt.s32.totalorder %s811_s22, 4 }
  0x18   : > { %s31_s10 = sadd.s32 1, %s803_s20  ;;  %s1136_s0 = sld [smem:[#allocation14_spill]] }
  0x19   : > { %s1133_s5 = scalar_select %p919_p12, 1, 0 }
  0x1a   : > { %p556_p0 = pneg %p919_p12  ;;  %p928_p1 = pnand %p569_p13, %p899_p5 }
  0x1c   : > { %s1134_s8 = scalar_select %p928_p1, 1, 0 }
  0x1d   : > { %p934_p2 = pnand %p556_p0, %p895_p3 }
  0x1e   : > { %s651_s13 = scalar_lea.hbm %s1136_s0, 64 }
  0x1f   : > { %p652_p4 = scmp.ne.s32.totalorder %s1136_s0, %s651_s13  ;;  %p653_p5 = pneg %p934_p2 }
  0x20   : > { %p658_p11 = scmp.lt.u32.totalorder %s651_s13, %s1136_s0 }
  0x21   : > { %p654_p6 = pnand %p653_p5, %p652_p4 }
  0x23   : > { %p655_p10 = pneg %p654_p6 }
  0x25   : > { %p660_p13 = pnand %p658_p11, %p655_p10 }
  0x27   : > { %663 = shalt.err (!%p660_p13)
}
  0x28   : > { %s664_s6 = scalar_lea.vmem %s172_s7, 64  ;;  %p672_p7 = scmp.lt.s32.totalorder %s172_s7, %s172_s7 }
  0x29   : > { %p665_p0 = scmp.ne.s32.totalorder %s172_s7, %s664_s6  ;;  %p673_p3 = scmp.lt.s32.totalorder %s664_s6, %s664_s6 }
  0x2b   : > { %p667_p9 = pnand %p665_p0, %p653_p5  ;;  %p674_p12 = por %p673_p3, %p672_p7 }
  0x2d   : > { %p668_p8 = pneg %p667_p9 }
  0x2f   : > { %p675_p1 = pnand %p674_p12, %p668_p8 }
  0x31   : > { %678 = shalt.err (!%p675_p1)
}
  0x32   : > { %559 = dma.hbm_to_vmem [thread:$0]  (!%p934_p2), %s1136_s0, 64, %s172_s7, [#allocation3]  }
  0x33   : > { %p32_p4 = scmp.ge.s32.totalorder %s31_s10, 2  ;;  %s34_s13 = sadd.s32 1, %s807_s21 }
  0x34   : > { %s182_s14 = sand.u32 1, %s791_s17   ;;  %s500_s23 = sshll.u32 %s807_s21, 5 }
  0x35   : > { %s1155_s10 = smov (%p32_p4, %s31_s10), 0  ;;  %s1157_s13 = smov (!%p32_p4, %s34_s13), %s807_s21 }
  0x36   : > { %1137 = sst [smem:[#allocation13_spill]] %s1155_s10  ;;  %s60_s9 = ssub.s32 %s803_s20, %s1155_s10 }
  0x37   : > { %p36_p3 = scmp.ge.s32.totalorder %s1157_s13, 2  ;;  %s499_s24 = sshll.u32 %s182_s14, 6 }
  0x38   : > { %s191_s27 = sadd.s32 %s803_s20, %s500_s23  ;;  %s186_s6 = scalar_lea.vmem [#allocation5], %s499_s24 }
  0x39   : > { %s1159_s13 = smov (%p36_p3, %s1157_s13), 0  ;;  %s501_s7 = sshll.u32 %s191_s27, 6 }
  0x3a   : > { %s194_s11 = sshll.u32 %s186_s6, 4  ;;  %s59_s12 = ssub.s32 %s807_s21, %s1159_s13  ;;  %s973_s11 = int_to_ptr.vmem [resolvable:$true] %s194_s11 }
  0x3b   : > { %s971_s30 = scalar_lea.hbm %s1112_s1, %s501_s7  ;;  %s61_s10 = sor.u32 %s60_s9, %s59_s12 }
  0x3c   : > { %p62_p7 = scmp.eq.s32.totalorder %s61_s10, 0  ;;  %s1138_s23 = sadd.s32 1, %s791_s17 }
  0x3d   : > { %s980_s27 = scalar_lea.sflag [#allocation6], %s182_s14  ;;  %s679_s24 = scalar_lea.hbm %s971_s30, 1024 }
  0x3e   : > { %s978_s20 = scalar_select %p62_p7, %s791_s17, %s1138_s23  }
  0x3f   : > { %p680_p8 = scmp.ne.s32.totalorder %s971_s30, %s679_s24  ;;  %p1139_p9 = scmp.ne.s32.totalorder %s1134_s8, 0 }
  0x40   : > { %s684_s9 = scalar_lea.hbm %s1112_s1, 4096  ;;  %p685_p5 = scmp.lt.u32.totalorder %s971_s30, %s1112_s1 }
  0x41   : > { %p681_p12 = pneg %p1139_p9  ;;  %p686_p6 = scmp.lt.u32.totalorder %s684_s9, %s679_s24 }
  0x42   : > { %p688_p11 = scmp.lt.u32.totalorder %s679_s24, %s971_s30 }
  0x43   : > { %p682_p1 = pnand %p681_p12, %p680_p8  ;;  %p687_p10 = por %p686_p6, %p685_p5 }
  0x45   : > { %p683_p2 = pneg %p682_p1  ;;  %p689_p13 = por %p688_p11, %p687_p10 }
  0x47   : > { %p690_p0 = pnand %p689_p13, %p683_p2 }
  0x49   : > { %693 = shalt.err (!%p690_p0)
}
  0x4a   : > { %s694_s10 = scalar_lea.vmem %s973_s11, 1024  ;;  %s814_s14 = smov [#allocation5]  }
  0x4b   : > { %p695_p4 = scmp.ne.s32.totalorder %s973_s11, %s694_s10  ;;  %s699_s12 = sshll.u32 %s814_s14, 4  ;;  %s700_s12 = int_to_ptr.vmem [resolvable:$false] %s699_s12 }
  0x4c   : > { %s701_s23 = scalar_lea.vmem %s700_s12, 2048  ;;  %p702_p8 = scmp.lt.s32.totalorder %s973_s11, %s700_s12 }
  0x4d   : > { %p697_p3 = pnand %p695_p4, %p681_p12  ;;  %p703_p1 = scmp.lt.s32.totalorder %s701_s23, %s694_s10 }
  0x4f   : > { %p698_p7 = pneg %p697_p3  ;;  %p704_p5 = por %p703_p1, %p702_p8 }
  0x51   : > { %p705_p6 = pnand %p704_p5, %p698_p7 }
  0x53   : > { %708 = shalt.err (!%p705_p6)
}
  0x54   : > { %s815_s24 = smov 128   ;;  %s816_s0 = smov 64  }
  0x55   : > { %s817_s25 = smov 4   ;;  %p1140_p12 = scmp.ne.s32.totalorder %s1133_s5, 0 }
  0x56   : > { %563 = dma.hbm_to_vmem [thread:$0]  (!%p1139_p9), %s971_s30, 1024, %s973_s11, %s980_s27, %s815_s24, %s816_s0, %s817_s25  }
  0x57   : > { %206 = sbr.rel (%p1140_p12) target bundleno = 505 (0x1f9), region = 28  ;;  %p1141_p2 = scmp.ne.s32.totalorder (!%p1140_p12), %s1127_s26, 0 }
  0x5e   : > { %770 = dma.done.wait (%p1141_p2), [#allocation3], 64  }
  0x5f   : > { %772 = vsyncadd (%p1141_p2), [#allocation3], 4294967232  ;;  %s1015_s9 = sand.u32 1, %s787_s16   ;;  %p1142_p9 = scmp.ne.s32.totalorder %s1129_s28, 0 }
  0x60   : > { %s504_s7 = sshll.u32 %s1015_s9, 6  ;;  %s213_s6 = scalar_lea.sflag [#allocation6], %s1015_s9 }
  0x61   : > { %s1019_s10 = scalar_lea.vmem [#allocation5], %s504_s7 }
  0x62   : > { %774 = dma.done.wait (%p1142_p9), %s213_s6, 1024  }
  0x63   : > { %776 = vsyncadd (%p1142_p9), %s213_s6, 4294966272  ;;  %s505_s26 = sshll.u32 %s1015_s9, 3  ;;  %p242_p10 = scmp.eq.s32.totalorder %s799_s19, 0 }
  0x64   : > { %p243_p11 = scmp.eq.s32.totalorder %s795_s18, 0  ;;  %s1028_s30 = scalar_lea.vmem [#allocation7], %s505_s26 }
  0x66   : > { %p244_p13 = pnand %p243_p11, %p242_p10 }
  0x67   : > { %vm248_vm0 = vcmask (!%p244_p13), 7168   ;;  %v818_v0 = vmov (!%p244_p13), 0.0  }
  0x68   : > { %247 = sbr.rel (%p244_p13) target bundleno = 111 (0x6f), region = 40  ;;  %249 = vst.msk [vmem:[%s1114_s3] sm:$0xff] (!%p244_p13), %vm248_vm0, %v818_v0  ;;  %250 = vst.msk [vmem:[%s1115_s4] sm:$0xff] (!%p244_p13), %vm248_vm0, %v818_v0 }
  0x6f PF: > { %v643_v1 = vld [vmem:[%s1019_s10] sm:$0xff]   ;;  %v819_v2 = vmov 0.0   ;;  %v644_v3 = vld [vmem:[%s1019_s10 + $0x8] sm:$0xff]   ;;  %vm820_vm1 = vmmov 0   ;;  %v645_v4 = vld [vmem:[%s1019_s10 + $0x10] sm:$0xff]   ;;  %s515_s28 = sshll.u32 %s799_s19, 1 }
  0x70   : > { %528 = vmatprep.subr.bf16.mxu0 %v819_v2  ;;  %544 = vmatprep.mubr.msk.bf16.mxu0 %vm820_vm1, %v819_v2  ;;  %v646_v5 = vld [vmem:[%s1019_s10 + $0x18] sm:$0xff]   ;;  %v647_v6 = vld [vmem:[%s1019_s10 + $0x20] sm:$0xff]   ;;  %v648_v7 = vld [vmem:[%s1019_s10 + $0x28] sm:$0xff]   ;;  %s381_s14 = sadd.s32 %s795_s18, %s515_s28  ;;  %s385_s23 = sshll.u32 %s1028_s30, 4  ;;  %s386_s23 = int_to_ptr.vmem [resolvable:$true] %s385_s23 }
  0x71   : > { %529 = vmatpush3.bf16.msra.mxu0 %v643_v1  ;;  %v649_v8 = vld [vmem:[%s1019_s10 + $0x30] sm:$0xff]   ;;  %v650_v9 = vld [vmem:[%s1019_s10 + $0x38] sm:$0xff]   ;;  %s516_s12 = sshll.u32 %s381_s14, 7  ;;  %s370_s7 = scalar_lea.sflag [#allocation4], %s1015_s9 }
  0x72   : > { %530 = vmatprep.subr.bf16.mxu0 %v819_v2  ;;  %v251_v10 = vld [vmem:[#allocation2] sm:$0xf]  ;;  %s1051_s25 = scalar_lea.hbm %s1113_s2, %s516_s12  ;;  %s709_s6 = scalar_lea.vmem %s386_s23, 128 }
  0x73   : > { %p710_p0 = scmp.ne.s32.totalorder %s386_s23, %s709_s6  ;;  %p1143_p4 = scmp.ne.s32.totalorder %s1130_s29, 0 }
  0x74   : > { %s821_s10 = smov [#allocation7]  }
  0x75   : > { %531 = vmatpush3.bf16.msra.mxu0 %v644_v3  ;;  %p711_p3 = pnand %p710_p0, %p1143_p4  ;;  %s713_s26 = sshll.u32 %s821_s10, 4  ;;  %s714_s26 = int_to_ptr.vmem [resolvable:$false] %s713_s26 }
  0x76   : > { %532 = vmatprep.subr.bf16.mxu0 %v819_v2  ;;  %s715_s5 = scalar_lea.vmem %s714_s26, 256  ;;  %p716_p8 = scmp.lt.s32.totalorder %s386_s23, %s714_s26 }
  0x77   : > { %p712_p7 = pneg %p711_p3  ;;  %p717_p1 = scmp.lt.s32.totalorder %s715_s5, %s709_s6 }
  0x79   : > { %533 = vmatpush3.bf16.msra.mxu0 %v645_v4  ;;  %p718_p5 = por %p717_p1, %p716_p8 }
  0x7a   : > { %534 = vmatprep.subr.bf16.mxu0 %v819_v2 }
  0x7b   : > { %p719_p6 = pnand %p718_p5, %p712_p7 }
  0x7d   : > { %535 = vmatpush3.bf16.msra.mxu0 %v646_v5 }
  0x7e   : > { %536 = vmatprep.subr.bf16.mxu0 %v819_v2 }
  0x81   : > { %537 = vmatpush3.bf16.msra.mxu0 %v647_v6 }
  0x82   : > { %538 = vmatprep.subr.bf16.mxu0 %v819_v2 }
  0x85   : > { %539 = vmatpush3.bf16.msra.mxu0 %v648_v7 }
  0x86   : > { %540 = vmatprep.subr.bf16.mxu0 %v819_v2 }
  0x89   : > { %541 = vmatpush3.bf16.msra.mxu0 %v649_v8 }
  0x8a   : > { %542 = vmatprep.subr.bf16.mxu0 %v819_v2 }
  0x8d   : > { %543 = vmatpush3.bf16.msra.mxu0 %v650_v9 }
  0x90   : > { %545 = vmatmul.mubr.bf16.vlgmr.msra.gmra.mrb[0].mxu0 %v251_v10 }
 0x163   : > { %v350_v11 = vpop.f32.mrb[0].mxu0 }
 0x164   : > { %356 = vst [vmem:[%s1028_s30] sm:$0xff] %v350_v11  ;;  %358 = vadd.xlane.f32.xlu0 %v350_v11  ;;  %v546_v12 = vpop.f32.mrb[1].mxu0  ;;  %v364_v15 = vmul.f32 %v350_v11, %v350_v11 }
 0x165   : > { %v353_v13 = vpop.f32.mrb[2].mxu0 }
 0x166   : > { %v547_v14 = vpop.f32.mrb[3].mxu0 }
 0x168   : > { %365 = vadd.xlane.f32.xlu0 %v364_v15 }
 0x169   : > { %722 = shalt.err (!%p719_p6)
}
 0x16a   : > { %s723_s18 = scalar_lea.hbm %s1051_s25, 128  ;;  %s727_s30 = scalar_lea.hbm %s1113_s2, 512 }
 0x16b   : > { %p724_p12 = scmp.ne.s32.totalorder %s1051_s25, %s723_s18  ;;  %p728_p10 = scmp.lt.u32.totalorder %s1051_s25, %s1113_s2 }
 0x16c   : > { %p729_p11 = scmp.lt.u32.totalorder %s727_s30, %s723_s18  ;;  %p731_p0 = scmp.lt.u32.totalorder %s723_s18, %s1051_s25 }
 0x16d   : > { %p725_p2 = pnand %p724_p12, %p1143_p4 }
 0x16e   : > { %p730_p13 = por %p729_p11, %p728_p10 }
 0x16f   : > { %p726_p9 = pneg %p725_p2 }
 0x170   : > { %p732_p3 = por %p731_p0, %p730_p13 }
 0x172   : > { %p733_p7 = pnand %p732_p3, %p726_p9 }
 0x174   : > { %736 = shalt.err (!%p733_p7)
}
 0x175   : > { %554 = dma.vmem_to_hbm [thread:$0]  (%p1143_p4), %s386_s23, 128, %s1051_s25, %s370_s7   ;;  %v357_v16 = vld [vmem:[%s1114_s3] sm:$0xff]  ;;  %vm361_vm2 = vcmask 7168  }
 0x176   : > { %v363_v19 = vld [vmem:[%s1115_s4] sm:$0xff] }
 0x1f1   : > { %v359_v17 = vpop.xlane.xlu0 %358 }
 0x1f2   : > { %v360_v18 = vadd.f32 %v359_v17, %v357_v16 }
 0x1f4   : > { %362 = vst.msk [vmem:[%s1114_s3] sm:$0xff] %vm361_vm2, %v360_v18 }
 0x1f5   : > { %v366_v20 = vpop.xlane.xlu0 %365 }
 0x1f6   : > { %v367_v21 = vadd.f32 %v366_v20, %v363_v19 }
 0x1f8   : > { %368 = vst.msk [vmem:[%s1115_s4] sm:$0xff] %vm361_vm2, %v367_v21 }
 0x1f9 PF: > { %s1144_s23 = sld [smem:[#allocation12_spill]]  ;;  %p571_p4 = scmp.ge.s32.totalorder %s811_s22, 2 }
 0x1fa   : > { %s409_s25 = sand.u32 1, %s783_s15  }
 0x1fb   : > { %s410_s7 = scalar_lea.sflag [#allocation4], %s409_s25 }
 0x1ff   : > { %p1145_p8 = scmp.ne.s32.totalorder %s1144_s23, 0 }
 0x201   : > { %p565_p1 = pnand %p571_p4, %p1145_p8 }
 0x203   : > { %778 = dma.done.wait (!%p565_p1), %s410_s7, 128  }
 0x204   : > { %780 = vsyncadd (!%p565_p1), %s410_s7, 4294967168  ;;  %s22_s22 = sadd.s32 1, %s811_s22   ;;  %s1146_s18 = sld [smem:[#allocation11_spill]] }
 0x205   : > { %p19_p5 = scmp.ge.s32.totalorder %s22_s22, 6   ;;  %s1147_s10 = sld [smem:[#allocation13_spill]] }
 0x206   : > { %s1148_s15 = smov %s787_s16  ;;  %s1149_s16 = smov %s791_s17 }
 0x207   : > { %s1150_s17 = smov %s978_s20  ;;  %s1151_s19 = smov %s807_s21 }
 0x208   : > { %s1153_s21 = smov %s1159_s13  ;;  %21 = sbr.rel (!%p19_p5) target bundleno = 10 (0xa), region = 98 }
 0x20b   : > { %s1152_s20 = smov %s1147_s10 }
 0x20f   :  { %415 = vsyncpa [#allocation3], 1 }
 0x210   :  { %417 = vsyncpa [#allocation3 + $0x1], 1 }
 0x211   :  { %418 = vsyncpa [#allocation6], 1 }
 0x212   :  { %420 = vsyncpa [#allocation6 + $0x1], 1 }
 0x213   :  { %421 = vsyncpa [#allocation4], 1 }
 0x214   :  { %423 = vsyncpa [#allocation4 + $0x1], 1 }

</bundles_post_ra>
